<compile_context>
chip_gen: v7x
topology: tpu7x:2x2x1
jax: 0.10.0
libtpu: 0.0.40
codegen_flags: <defaults>
</compile_context>

<pallas_src>
import math

import numpy as np
import jax
import jax.numpy as jnp
from jax.experimental import pallas as pl
from jax.experimental.pallas import tpu as pltpu

# ----- SincConv config (PyTorch module defaults) -----
IN_CHANNELS = 1
OUT_CHANNELS = 80
KERNEL_SIZE = 251
SAMPLE_RATE = 16000
MIN_FREQ = 20.0
STRIDE = KERNEL_SIZE // 4                 # 62
PADDING = 0
N_PHASE = -(-KERNEL_SIZE // STRIDE)       # ceil(K / stride) = 5
K_PAD = N_PHASE * STRIDE                  # 310 (tap axis zero-padded)

# Output frames per grid step (multiple of 128 for lane-dense stores).
# Per-step VMEM at 1024: x window ~255 KiB (x2), out block ~320 KiB (x2),
# acc scratch ~320 KiB, weight ~100 KiB  ->  < 2 MiB total.
TILE_L = 1024

# Flip to jnp.bfloat16 on v6e/v7x for extra MXU headroom if accuracy allows.
COMPUTE_DTYPE = jnp.float32


# ---------------- parameter initialization (deterministic) ----------------
def _to_mel(hz):
    return 2595.0 * np.log10(1.0 + hz / 700.0)


def _to_hz(mel):
    return 700.0 * (10.0 ** (mel / 2595.0) - 1.0)


def _get_freq_points(sample_rate, num_filters, min_freq):
    low_mel = _to_mel(min_freq)
    high_mel = _to_mel(sample_rate // 2)
    mel_points = np.linspace(low_mel, high_mel, num_filters + 1)
    return _to_hz(mel_points) / sample_rate


def init_params():
    fp = _get_freq_points(SAMPLE_RATE, OUT_CHANNELS, MIN_FREQ)
    bands_low_freq = jnp.asarray(fp[:-1].reshape(-1, 1), dtype=jnp.float32)  # (C_out, 1)
    bands = jnp.asarray(np.diff(fp).reshape(-1, 1), dtype=jnp.float32)       # (C_out, 1)
    # torch.hamming_window(K) default: periodic=True, alpha=0.54, beta=0.46
    k = np.arange(KERNEL_SIZE)
    window = jnp.asarray(0.54 - 0.46 * np.cos(2.0 * np.pi * k / KERNEL_SIZE),
                         dtype=jnp.float32)                                  # (K,)
    half = (KERNEL_SIZE - 1) / 2
    n = jnp.asarray(2.0 * math.pi * np.arange(-half, half + 1.0),
                    dtype=jnp.float32)                                       # (K,)
    return bands_low_freq, bands, window, n


# ---------------- weight construction (parameter setup, plain JAX) ----------------
def _sinc(x):
    # torch.sinc semantics: sin(pi*x)/(pi*x), sinc(0) = 1
    px = jnp.pi * x
    safe = jnp.where(x == 0.0, 1.0, px)
    return jnp.where(x == 0.0, 1.0, jnp.sin(safe) / safe)


def get_weight_from_bands(bands_low_freq, bands, window, n):
    # NOTE: the stacked 2*pi / pi / SAMPLE_RATE factors intentionally replicate
    # the torch module verbatim: arg = 2*pi*f*n*sample_rate with n already
    # containing 2*pi and torch.sinc adding another pi.
    f1 = jnp.abs(bands_low_freq)                          # (C_out, 1)
    f2 = jnp.abs(bands_low_freq) + jnp.abs(bands)         # (C_out, 1)
    arg1 = 2.0 * math.pi * f1 * n[None, :] * SAMPLE_RATE  # (C_out, K)
    arg2 = 2.0 * math.pi * f2 * n[None, :] * SAMPLE_RATE
    s1 = _sinc(arg1).at[:, KERNEL_SIZE // 2].set(1.0)     # matches torch sinc() override
    s2 = _sinc(arg2).at[:, KERNEL_SIZE // 2].set(1.0)
    kern = 2.0 * f2 * s2 - 2.0 * f1 * s1                  # (C_out, K)
    # per-filter signed max, matching `kernel / kernel.max()` in the torch loop
    kern = kern / jnp.max(kern, axis=1, keepdims=True)
    return kern * window[None, :]                         # (C_out, K)


# ---------------- Pallas kernel: 5 phase matmuls per (batch, L-tile) step ----------------
def sinc_conv_kernel(xw_ref, w_ref, o_ref, acc_ref):
    # xw_ref : (1, 1, tile_l + N_PHASE - 1, STRIDE)  frame-major input window
    # w_ref  : (N_PHASE, C_out, STRIDE)              phase-major filter bank
    # o_ref  : (1, C_out, tile_l)                    lane-dense output block
    # acc_ref: (C_out, tile_l) f32 scratch accumulator
    n_phase = w_ref.shape[0]
    tile_l = o_ref.shape[2]
    for p in range(n_phase):                              # static, 5 iterations
        xp = xw_ref[0, 0, p:p + tile_l, :]                # (tile_l, STRIDE) sublane slab
        contrib = jax.lax.dot_general(
            w_ref[p], xp,
            dimension_numbers=(((1,), (1,)), ((), ())),   # contract over STRIDE
            preferred_element_type=jnp.float32)           # (C_out, tile_l)
        if p == 0:
            acc_ref[...] = contrib
        else:
            acc_ref[...] += contrib
    o_ref[0, :, :] = acc_ref[...].astype(o_ref.dtype)


def _round_up(v, m):
    return ((v + m - 1) // m) * m


@jax.jit
def sinc_conv_forward(x, bands_low_freq, bands, window, n):
    B, c_in, T = x.shape
    assert c_in == IN_CHANNELS == 1
    out_dtype = x.dtype

    # Filter bank -> zero-pad tap axis to N_PHASE*STRIDE, make it phase-major:
    # w3[p, o, r] = W[o, p*STRIDE + r]  (zero for taps >= K).
    weight = get_weight_from_bands(bands_low_freq, bands, window, n)       # (C_out, K)
    w_pad = jnp.pad(weight, ((0, 0), (0, K_PAD - KERNEL_SIZE)))            # (C_out, 310)
    w3 = jnp.transpose(w_pad.reshape(OUT_CHANNELS, N_PHASE, STRIDE), (1, 0, 2))
    w3 = w3.astype(COMPUTE_DTYPE)                                          # (5, C_out, S)

    l_out = (T + 2 * PADDING - KERNEL_SIZE) // STRIDE + 1
    tile_l = min(TILE_L, _round_up(l_out, 128))
    n_tiles = pl.cdiv(l_out, tile_l)
    l_pad = n_tiles * tile_l

    # Frame-major view: x2[b, m, r] = x[b, m*STRIDE + r], zero-padded so every
    # tile window exists.  Extra / padded samples only ever meet zero-padded
    # weight taps (k >= K) or frames that are cropped, so results are exact.
    n_rows_p = (n_tiles + 1) * tile_l
    x_flat = jnp.pad(x[:, 0, :], ((0, 0), (0, n_rows_p * STRIDE - T)))
    x2 = x_flat.reshape(B, n_rows_p, STRIDE)
    # Overlapping per-tile windows: tile t needs frames [t*tile_l, t*tile_l + tile_l + 4).
    rows_main = x2[:, :l_pad].reshape(B, n_tiles, tile_l, STRIDE)
    rows_next = x2[:, tile_l:].reshape(B, n_tiles, tile_l, STRIDE)[:, :, :N_PHASE - 1]
    x_win = jnp.concatenate([rows_main, rows_next], axis=2)   # (B, n_tiles, tile_l+4, S)
    x_win = x_win.astype(COMPUTE_DTYPE)

    out = pl.pallas_call(
        sinc_conv_kernel,
        out_shape=jax.ShapeDtypeStruct((B, OUT_CHANNELS, l_pad), out_dtype),
        grid_spec=pltpu.PrefetchScalarGridSpec(
            num_scalar_prefetch=0,
            grid=(B, n_tiles),
            in_specs=[
                pl.BlockSpec((1, 1, tile_l + N_PHASE - 1, STRIDE),
                             lambda b, t: (b, t, 0, 0)),
                pl.BlockSpec((N_PHASE, OUT_CHANNELS, STRIDE),
                             lambda b, t: (0, 0, 0)),      # resident across the grid
            ],
            out_specs=pl.BlockSpec((1, OUT_CHANNELS, tile_l),
                                   lambda b, t: (b, 0, t)),
            scratch_shapes=[pltpu.VMEM((OUT_CHANNELS, tile_l), jnp.float32)],
        ),
        compiler_params=pltpu.CompilerParams(
            dimension_semantics=("parallel", "parallel")),
    )(x_win, w3)
    return out[:, :, :l_out]


if __name__ == "__main__":
    key = jax.random.PRNGKey(0)
    B = 2
    # Small input: 16 output frames -> T = K + 15 * stride
    T = KERNEL_SIZE + 15 * STRIDE  # 1181
    x = jax.random.normal(key, (B, IN_CHANNELS, T), dtype=jnp.float32)

    params = init_params()
    out = sinc_conv_forward(x, *params)
    out = jax.block_until_ready(out)

    expected_l = (T - KERNEL_SIZE) // STRIDE + 1
    assert out.shape == (B, OUT_CHANNELS, expected_l), out.shape
    assert bool(jnp.all(jnp.isfinite(out)))

    # Pure-JAX reference (im2col + high-precision einsum) correctness check.
    w_full = get_weight_from_bands(*params)                           # (C_out, K)
    idx = np.arange(expected_l)[:, None] * STRIDE + np.arange(KERNEL_SIZE)[None, :]
    patches = x[:, 0, :][:, idx]                                      # (B, L_out, K)
    ref = jnp.einsum("blk,ok->bol", patches, w_full,
                     precision=jax.lax.Precision.HIGHEST)
    assert bool(jnp.allclose(out, ref, rtol=1e-2, atol=1e-2)), \
        float(jnp.max(jnp.abs(out - ref)))

    print("KERNEL_OK")
</pallas_src>

<mosaic_0001>
module attributes {stable_mosaic.version = 11 : i64} {
  func.func @sinc_conv_kernel(%arg0: i32, %arg1: i32, %arg2: memref<1x1x132x62xf32, #tpu.memory_space<vmem>>, %arg3: memref<5x80x62xf32, #tpu.memory_space<vmem>>, %arg4: memref<1x80x128xf32, #tpu.memory_space<vmem>>, %arg5: memref<80x128xf32, #tpu.memory_space<vmem>>) attributes {dimension_semantics = [#tpu.dimension_semantics<parallel>, #tpu.dimension_semantics<parallel>], iteration_bounds = array<i64: 2, 1>, scalar_prefetch = 0 : i64, scratch_operands = 1 : i64, tpu.core_type = #tpu.core_type<tc>, window_params = [{transform_indices = @transform_0, window_bounds = array<i64: 1, 1, 132, 62>}, {pipeline_mode = #tpu.pipeline_mode<synchronous>, transform_indices = @transform_1, window_bounds = array<i64: 5, 80, 62>}, {transform_indices = @transform_2, window_bounds = array<i64: 1, 80, 128>}]} {
    %c0 = arith.constant 0 : index
    %c0_0 = arith.constant 0 : index
    %c0_1 = arith.constant 0 : index
    %c0_2 = arith.constant 0 : index
    %0 = vector.load %arg2[%c0, %c0_0, %c0_1, %c0_2] : memref<1x1x132x62xf32, #tpu.memory_space<vmem>>, vector<1x1x128x62xf32>
    %1 = vector.shape_cast %0 : vector<1x1x128x62xf32> to vector<128x62xf32>
    %c0_3 = arith.constant 0 : index
    %c0_4 = arith.constant 0 : index
    %c0_5 = arith.constant 0 : index
    %2 = vector.load %arg3[%c0_3, %c0_4, %c0_5] : memref<5x80x62xf32, #tpu.memory_space<vmem>>, vector<1x80x62xf32>
    %3 = vector.shape_cast %2 : vector<1x80x62xf32> to vector<80x62xf32>
    %cst = arith.constant dense<0.000000e+00> : vector<80x128xf32>
    %4 = tpu.matmul %3, %1, %cst {dimension_numbers = #tpu.dot_dimension_numbers<[1], [1], [0], [0], [0, 0, 1, 0], [], []>} : vector<80x62xf32>, vector<128x62xf32>, vector<80x128xf32> -> vector<80x128xf32>
    %c0_6 = arith.constant 0 : index
    %c0_7 = arith.constant 0 : index
    %5 = vector.load %arg5[%c0_6, %c0_7] : memref<80x128xf32, #tpu.memory_space<vmem>>, vector<80x128xf32>
    tpu.vector_store %arg5[%c0_6, %c0_7], %4 {strides = array<i32>} : memref<80x128xf32, #tpu.memory_space<vmem>>, vector<80x128xf32>,
    %c0_8 = arith.constant 0 : index
    %c0_9 = arith.constant 0 : index
    %c1 = arith.constant 1 : index
    %c0_10 = arith.constant 0 : index
    %6 = vector.load %arg2[%c0_8, %c0_9, %c1, %c0_10] : memref<1x1x132x62xf32, #tpu.memory_space<vmem>>, vector<1x1x128x62xf32>
    %7 = vector.shape_cast %6 : vector<1x1x128x62xf32> to vector<128x62xf32>
    %c1_11 = arith.constant 1 : index
    %c0_12 = arith.constant 0 : index
    %c0_13 = arith.constant 0 : index
    %8 = vector.load %arg3[%c1_11, %c0_12, %c0_13] : memref<5x80x62xf32, #tpu.memory_space<vmem>>, vector<1x80x62xf32>
    %9 = vector.shape_cast %8 : vector<1x80x62xf32> to vector<80x62xf32>
    %cst_14 = arith.constant dense<0.000000e+00> : vector<80x128xf32>
    %10 = tpu.matmul %9, %7, %cst_14 {dimension_numbers = #tpu.dot_dimension_numbers<[1], [1], [0], [0], [0, 0, 1, 0], [], []>} : vector<80x62xf32>, vector<128x62xf32>, vector<80x128xf32> -> vector<80x128xf32>
    %c0_15 = arith.constant 0 : index
    %c0_16 = arith.constant 0 : index
    %11 = vector.load %arg5[%c0_15, %c0_16] : memref<80x128xf32, #tpu.memory_space<vmem>>, vector<80x128xf32>
    %12 = arith.addf %11, %10 : vector<80x128xf32>
    %c0_17 = arith.constant 0 : index
    %c0_18 = arith.constant 0 : index
    %13 = vector.load %arg5[%c0_17, %c0_18] : memref<80x128xf32, #tpu.memory_space<vmem>>, vector<80x128xf32>
    tpu.vector_store %arg5[%c0_17, %c0_18], %12 {strides = array<i32>} : memref<80x128xf32, #tpu.memory_space<vmem>>, vector<80x128xf32>,
    %c0_19 = arith.constant 0 : index
    %c0_20 = arith.constant 0 : index
    %c2 = arith.constant 2 : index
    %c0_21 = arith.constant 0 : index
    %14 = vector.load %arg2[%c0_19, %c0_20, %c2, %c0_21] : memref<1x1x132x62xf32, #tpu.memory_space<vmem>>, vector<1x1x128x62xf32>
    %15 = vector.shape_cast %14 : vector<1x1x128x62xf32> to vector<128x62xf32>
    %c2_22 = arith.constant 2 : index
    %c0_23 = arith.constant 0 : index
    %c0_24 = arith.constant 0 : index
    %16 = vector.load %arg3[%c2_22, %c0_23, %c0_24] : memref<5x80x62xf32, #tpu.memory_space<vmem>>, vector<1x80x62xf32>
    %17 = vector.shape_cast %16 : vector<1x80x62xf32> to vector<80x62xf32>
    %cst_25 = arith.constant dense<0.000000e+00> : vector<80x128xf32>
    %18 = tpu.matmul %17, %15, %cst_25 {dimension_numbers = #tpu.dot_dimension_numbers<[1], [1], [0], [0], [0, 0, 1, 0], [], []>} : vector<80x62xf32>, vector<128x62xf32>, vector<80x128xf32> -> vector<80x128xf32>
    %c0_26 = arith.constant 0 : index
    %c0_27 = arith.constant 0 : index
    %19 = vector.load %arg5[%c0_26, %c0_27] : memref<80x128xf32, #tpu.memory_space<vmem>>, vector<80x128xf32>
    %20 = arith.addf %19, %18 : vector<80x128xf32>
    %c0_28 = arith.constant 0 : index
    %c0_29 = arith.constant 0 : index
    %21 = vector.load %arg5[%c0_28, %c0_29] : memref<80x128xf32, #tpu.memory_space<vmem>>, vector<80x128xf32>
    tpu.vector_store %arg5[%c0_28, %c0_29], %20 {strides = array<i32>} : memref<80x128xf32, #tpu.memory_space<vmem>>, vector<80x128xf32>,
    %c0_30 = arith.constant 0 : index
    %c0_31 = arith.constant 0 : index
    %c3 = arith.constant 3 : index
    %c0_32 = arith.constant 0 : index
    %22 = vector.load %arg2[%c0_30, %c0_31, %c3, %c0_32] : memref<1x1x132x62xf32, #tpu.memory_space<vmem>>, vector<1x1x128x62xf32>
    %23 = vector.shape_cast %22 : vector<1x1x128x62xf32> to vector<128x62xf32>
    %c3_33 = arith.constant 3 : index
    %c0_34 = arith.constant 0 : index
    %c0_35 = arith.constant 0 : index
    %24 = vector.load %arg3[%c3_33, %c0_34, %c0_35] : memref<5x80x62xf32, #tpu.memory_space<vmem>>, vector<1x80x62xf32>
    %25 = vector.shape_cast %24 : vector<1x80x62xf32> to vector<80x62xf32>
    %cst_36 = arith.constant dense<0.000000e+00> : vector<80x128xf32>
    %26 = tpu.matmul %25, %23, %cst_36 {dimension_numbers = #tpu.dot_dimension_numbers<[1], [1], [0], [0], [0, 0, 1, 0], [], []>} : vector<80x62xf32>, vector<128x62xf32>, vector<80x128xf32> -> vector<80x128xf32>
    %c0_37 = arith.constant 0 : index
    %c0_38 = arith.constant 0 : index
    %27 = vector.load %arg5[%c0_37, %c0_38] : memref<80x128xf32, #tpu.memory_space<vmem>>, vector<80x128xf32>
    %28 = arith.addf %27, %26 : vector<80x128xf32>
    %c0_39 = arith.constant 0 : index
    %c0_40 = arith.constant 0 : index
    %29 = vector.load %arg5[%c0_39, %c0_40] : memref<80x128xf32, #tpu.memory_space<vmem>>, vector<80x128xf32>
    tpu.vector_store %arg5[%c0_39, %c0_40], %28 {strides = array<i32>} : memref<80x128xf32, #tpu.memory_space<vmem>>, vector<80x128xf32>,
    %c0_41 = arith.constant 0 : index
    %c0_42 = arith.constant 0 : index
    %c4 = arith.constant 4 : index
    %c0_43 = arith.constant 0 : index
    %30 = vector.load %arg2[%c0_41, %c0_42, %c4, %c0_43] : memref<1x1x132x62xf32, #tpu.memory_space<vmem>>, vector<1x1x128x62xf32>
    %31 = vector.shape_cast %30 : vector<1x1x128x62xf32> to vector<128x62xf32>
    %c4_44 = arith.constant 4 : index
    %c0_45 = arith.constant 0 : index
    %c0_46 = arith.constant 0 : index
    %32 = vector.load %arg3[%c4_44, %c0_45, %c0_46] : memref<5x80x62xf32, #tpu.memory_space<vmem>>, vector<1x80x62xf32>
    %33 = vector.shape_cast %32 : vector<1x80x62xf32> to vector<80x62xf32>
    %cst_47 = arith.constant dense<0.000000e+00> : vector<80x128xf32>
    %34 = tpu.matmul %33, %31, %cst_47 {dimension_numbers = #tpu.dot_dimension_numbers<[1], [1], [0], [0], [0, 0, 1, 0], [], []>} : vector<80x62xf32>, vector<128x62xf32>, vector<80x128xf32> -> vector<80x128xf32>
    %c0_48 = arith.constant 0 : index
    %c0_49 = arith.constant 0 : index
    %35 = vector.load %arg5[%c0_48, %c0_49] : memref<80x128xf32, #tpu.memory_space<vmem>>, vector<80x128xf32>
    %36 = arith.addf %35, %34 : vector<80x128xf32>
    %c0_50 = arith.constant 0 : index
    %c0_51 = arith.constant 0 : index
    %37 = vector.load %arg5[%c0_50, %c0_51] : memref<80x128xf32, #tpu.memory_space<vmem>>, vector<80x128xf32>
    tpu.vector_store %arg5[%c0_50, %c0_51], %36 {strides = array<i32>} : memref<80x128xf32, #tpu.memory_space<vmem>>, vector<80x128xf32>,
    %c0_52 = arith.constant 0 : index
    %c0_53 = arith.constant 0 : index
    %38 = vector.load %arg5[%c0_52, %c0_53] : memref<80x128xf32, #tpu.memory_space<vmem>>, vector<80x128xf32>
    %c0_54 = arith.constant 0 : index
    %c0_55 = arith.constant 0 : index
    %c0_56 = arith.constant 0 : index
    %39 = vector.load %arg4[%c0_54, %c0_55, %c0_56] : memref<1x80x128xf32, #tpu.memory_space<vmem>>, vector<1x80x128xf32>
    %40 = vector.shape_cast %39 : vector<1x80x128xf32> to vector<80x128xf32>
    %41 = vector.shape_cast %38 : vector<80x128xf32> to vector<1x80x128xf32>
    tpu.vector_store %arg4[%c0_54, %c0_55, %c0_56], %41 {strides = array<i32>} : memref<1x80x128xf32, #tpu.memory_space<vmem>>, vector<1x80x128xf32>,
    return
  }
  func.func @transform_0(%arg0: i32, %arg1: i32) -> (i32, i32, i32, i32) {
    %c0_i32 = arith.constant 0 : i32
    %c0_i32_0 = arith.constant 0 : i32
    %c0_i32_1 = arith.constant 0 : i32
    return %arg0, %arg1, %c0_i32, %c0_i32_0 : i32, i32, i32, i32
  }
  func.func @transform_1(%arg0: i32, %arg1: i32) -> (i32, i32, i32) {
    %c0_i32 = arith.constant 0 : i32
    %c0_i32_0 = arith.constant 0 : i32
    %c0_i32_1 = arith.constant 0 : i32
    %c0_i32_2 = arith.constant 0 : i32
    return %c0_i32, %c0_i32_0, %c0_i32_1 : i32, i32, i32
  }
  func.func @transform_2(%arg0: i32, %arg1: i32) -> (i32, i32, i32) {
    %c0_i32 = arith.constant 0 : i32
    %c0_i32_0 = arith.constant 0 : i32
    return %arg0, %c0_i32, %arg1 : i32, i32, i32
  }
}

</mosaic_0001>

<bundles_post_ra>
// kernel: sinc_conv_forward.1
= control target key start
LH: loop header
LB: loop body
LE: loop exit
PB: predicated region body
PF: predicated region fallthrough
CT: control target
= control target key end

     0   :  { %s2419_s9 = smov 0   ;;  %s2421_s10 = smov 0   ;;  %s2936_s0 = inlined_call_operand.vmem [shape: f32[2,1,132,62], index: 0, kind: input, shape index: {}]   ;;  %s2937_s1 = inlined_call_operand.vmem [shape: f32[5,80,62], index: 1, kind: input, shape index: {}]   ;;  %s2938_s2 = inlined_call_operand.vmem [shape: f32[2,80,128], index: 2, kind: output, shape index: {}]  }
   0x1   :  { %s2423_s11 = smov 0  }
   0x2 LB: > { %s24_s12 = sadd.s32 1, %s2398_s10  ;;  %p1518_p0 = scmp.ge.s32.totalorder %s2402_s11, 1  ;;  %s2402_s11 = sphi %s2423_s11, %s12_s11   ;;  %s2398_s10 = sphi %s2421_s10, %s2942_s10   ;;  %s2394_s9 = sphi %s2419_s9, %s2941_s9  }
   0x3   : > { %p26_p1 = scmp.ge.s32.totalorder %s24_s12, 2  ;;  %p132_p2 = scmp.lt.s32.totalorder %s2402_s11, 3 }
   0x5   : > { %s2944_s12 = smov (%p26_p1, %s24_s12), 0  ;;  %p133_p3 = pnand %p1518_p0, %p132_p2 }
   0x6   : > { %p161_p4 = scmp.lt.s32.totalorder (!%p133_p3), %s2394_s9, 1  ;;  %vm204_vm0 = vcmask (!%p133_p3), 506880   ;;  %v194_v0 = vld [vmem:[%s2937_s1] sm:$0xff] (!%p133_p3)  ;;  %v195_v61 = vld [vmem:[%s2937_s1 + $0x8] sm:$0xff] (!%p133_p3) }
   0x7   : > { %136 = sbr.rel (%p133_p3) target bundleno = 438 (0x1b6), region = 28  ;;  %v1583_v1 = vld [vmem:[%s2937_s1 + $0xa0] sm:$0xff] (!%p133_p3)  ;;  %1855 = vmatprep.mubr.msk.f32.mxu1 (!%p133_p3), %vm204_vm0, %v194_v0  ;;  %vm2455_vm1 = vmpackc.low (!%p133_p3), %vm204_vm0, %vm204_vm0  ;;  %v1584_v62 = vld [vmem:[%s2937_s1 + $0xa8] sm:$0xff] (!%p133_p3) }
   0x8   : > { %1949 = vmatprep.mubr.msk.f32.mxu0 (!%p133_p3), %vm204_vm0, %v1583_v1  ;;  %v196_v1 = vld [vmem:[%s2937_s1 + $0x10] sm:$0xff] (!%p133_p3)  ;;  %v1664_v2 = vld [vmem:[%s2937_s1 + $0x188] sm:$0xff] (!%p133_p3) }
   0xe   : > { %s2946_s9 = smov (!%p161_p4, %s2394_s9), 1 }
   0xf   : > { %s2354_s17 = smul.u32 136, %s2946_s9 }
  0x10   : > { %s2355_s24 = smul.u32 80, %s2946_s9 }
  0x11   : > { %s2451_s20 = scalar_lea.vmem %s2936_s0, %s2354_s17 }
  0x12   : > { %v178_v3 = vld [vmem:[%s2451_s20] sm:$0xff]  ;;  %v179_v4 = vld [vmem:[%s2451_s20 + $0x8] sm:$0xff]  ;;  %v180_v8 = vld [vmem:[%s2451_s20 + $0x10] sm:$0xff]  ;;  %s177_s27 = scalar_lea.vmem %s2938_s2, %s2355_s24 }
  0x13   : > { %v658_v5 = vld [vmem:[%s2451_s20 + $0x2] sm:$0xff]  ;;  %v2058_v6 = vpack.c.bf16 %v179_v4, %v178_v3  ;;  %v659_v7 = vld [vmem:[%s2451_s20 + $0xa] sm:$0xff]  ;;  %v181_v9 = vld [vmem:[%s2451_s20 + $0x18] sm:$0xff] }
  0x14   : > { %v2154_v10 = vpack.c.bf16 %v659_v7, %v658_v5  ;;  %v2064_v11 = vpack.c.bf16 %v181_v9, %v180_v8  ;;  %v660_v12 = vld [vmem:[%s2451_s20 + $0x12] sm:$0xff]  ;;  %v661_v13 = vld [vmem:[%s2451_s20 + $0x1a] sm:$0xff]  ;;  %v183_v16 = vld [vmem:[%s2451_s20 + $0x28] sm:$0xff] }
  0x15   : > { %2060 = vmatprep.subr.msk.bf16.mxu1 %vm2455_vm1, %v2058_v6  ;;  %v2160_v14 = vpack.c.bf16 %v661_v13, %v660_v12  ;;  %v182_v15 = vld [vmem:[%s2451_s20 + $0x20] sm:$0xff]  ;;  %v663_v18 = vld [vmem:[%s2451_s20 + $0x2a] sm:$0xff]  ;;  %v185_v22 = vld [vmem:[%s2451_s20 + $0x38] sm:$0xff] }
  0x16   : > { %2156 = vmatprep.subr.msk.bf16.mxu0 %vm2455_vm1, %v2154_v10  ;;  %2063 = vmatpush3.bf16.xpose.msk.msra.mxu1 %vm2455_vm1, %v2058_v6  ;;  %v662_v17 = vld [vmem:[%s2451_s20 + $0x22] sm:$0xff]  ;;  %v2070_v19 = vpack.c.bf16 %v183_v16, %v182_v15  ;;  %v184_v21 = vld [vmem:[%s2451_s20 + $0x30] sm:$0xff]  ;;  %v665_v24 = vld [vmem:[%s2451_s20 + $0x3a] sm:$0xff] }
  0x17   : > { %2159 = vmatpush3.bf16.xpose.msk.msra.mxu0 %vm2455_vm1, %v2154_v10  ;;  %2066 = vmatprep.subr.msk.bf16.mxu1 %vm2455_vm1, %v2064_v11  ;;  %v2166_v20 = vpack.c.bf16 %v663_v18, %v662_v17  ;;  %v664_v23 = vld [vmem:[%s2451_s20 + $0x32] sm:$0xff]  ;;  %v2076_v25 = vpack.c.bf16 %v185_v22, %v184_v21  ;;  %v186_v27 = vld [vmem:[%s2451_s20 + $0x40] sm:$0xff]  ;;  %v187_v28 = vld [vmem:[%s2451_s20 + $0x48] sm:$0xff] }
  0x18   : > { %2162 = vmatprep.subr.msk.bf16.mxu0 %vm2455_vm1, %v2160_v14  ;;  %v2172_v26 = vpack.c.bf16 %v665_v24, %v664_v23  ;;  %v666_v29 = vld [vmem:[%s2451_s20 + $0x42] sm:$0xff]  ;;  %v667_v30 = vld [vmem:[%s2451_s20 + $0x4a] sm:$0xff]  ;;  %v2082_v31 = vpack.c.bf16 %v187_v28, %v186_v27  ;;  %v189_v34 = vld [vmem:[%s2451_s20 + $0x58] sm:$0xff] }
  0x19   : > { %v2178_v32 = vpack.c.bf16 %v667_v30, %v666_v29  ;;  %v188_v33 = vld [vmem:[%s2451_s20 + $0x50] sm:$0xff]  ;;  %v669_v36 = vld [vmem:[%s2451_s20 + $0x5a] sm:$0xff]  ;;  %v191_v40 = vld [vmem:[%s2451_s20 + $0x68] sm:$0xff] }
  0x1a   : > { %v668_v35 = vld [vmem:[%s2451_s20 + $0x52] sm:$0xff]  ;;  %v2088_v37 = vpack.c.bf16 %v189_v34, %v188_v33  ;;  %v190_v39 = vld [vmem:[%s2451_s20 + $0x60] sm:$0xff]  ;;  %v671_v42 = vld [vmem:[%s2451_s20 + $0x6a] sm:$0xff] }
  0x1b   : > { %v2184_v38 = vpack.c.bf16 %v669_v36, %v668_v35  ;;  %v670_v41 = vld [vmem:[%s2451_s20 + $0x62] sm:$0xff]  ;;  %v2094_v43 = vpack.c.bf16 %v191_v40, %v190_v39  ;;  %v192_v45 = vld [vmem:[%s2451_s20 + $0x70] sm:$0xff]  ;;  %v193_v46 = vld [vmem:[%s2451_s20 + $0x78] sm:$0xff] }
  0x1c   : > { %v2190_v44 = vpack.c.bf16 %v671_v42, %v670_v41  ;;  %v672_v47 = vld [vmem:[%s2451_s20 + $0x72] sm:$0xff]  ;;  %v673_v48 = vld [vmem:[%s2451_s20 + $0x7a] sm:$0xff]  ;;  %v2100_v49 = vpack.c.bf16 %v193_v46, %v192_v45  ;;  %v409_v52 = vld [vmem:[%s2451_s20 + $0x9] sm:$0xff] }
  0x1d   : > { %v2196_v50 = vpack.c.bf16 %v673_v48, %v672_v47  ;;  %v408_v51 = vld [vmem:[%s2451_s20 + $0x1] sm:$0xff]  ;;  %v909_v54 = vld [vmem:[%s2451_s20 + $0xb] sm:$0xff]  ;;  %v411_v58 = vld [vmem:[%s2451_s20 + $0x19] sm:$0xff] }
  0x1e   : > { %2069 = vmatpush3.bf16.xpose.msk.msra.mxu1 %vm2455_vm1, %v2064_v11  ;;  %v908_v53 = vld [vmem:[%s2451_s20 + $0x3] sm:$0xff]  ;;  %v2106_v55 = vpack.c.bf16 %v409_v52, %v408_v51  ;;  %v410_v57 = vld [vmem:[%s2451_s20 + $0x11] sm:$0xff]  ;;  %v911_v60 = vld [vmem:[%s2451_s20 + $0x1b] sm:$0xff] }
  0x1f   : > { %2165 = vmatpush3.bf16.xpose.msk.msra.mxu0 %vm2455_vm1, %v2160_v14  ;;  %2072 = vmatprep.subr.msk.bf16.mxu1 %vm2455_vm1, %v2070_v19  ;;  %v2202_v56 = vpack.c.bf16 %v909_v54, %v908_v53  ;;  %v910_v59 = vld [vmem:[%s2451_s20 + $0x13] sm:$0xff]  ;;  %v2112_v63 = vpack.c.bf16 %v411_v58, %v410_v57  ;;  %v198_v6 = vld [vmem:[%s2937_s1 + $0x20] sm:$0xff]  ;;  %v413_v8 = vld [vmem:[%s2451_s20 + $0x29] sm:$0xff] }
  0x20   : > { %2168 = vmatprep.subr.msk.bf16.mxu0 %vm2455_vm1, %v2166_v20  ;;  %v2208_v0 = vpack.c.bf16 %v911_v60, %v910_v59  ;;  %v1585_v3 = vld [vmem:[%s2937_s1 + $0xb0] sm:$0xff]  ;;  %v197_v4 = vld [vmem:[%s2937_s1 + $0x18] sm:$0xff]  ;;  %v412_v7 = vld [vmem:[%s2451_s20 + $0x21] sm:$0xff] }
  0x21   : > { %v1586_v5 = vld [vmem:[%s2937_s1 + $0xb8] sm:$0xff]  ;;  %v1587_v9 = vld [vmem:[%s2937_s1 + $0xc0] sm:$0xff]  ;;  %v913_v11 = vld [vmem:[%s2451_s20 + $0x2b] sm:$0xff]  ;;  %v2118_v13 = vpack.c.bf16 %v413_v8, %v412_v7 }
  0x22   : > { %v912_v10 = vld [vmem:[%s2451_s20 + $0x23] sm:$0xff]  ;;  %v200_v16 = vld [vmem:[%s2937_s1 + $0x30] sm:$0xff]  ;;  %v201_v18 = vld [vmem:[%s2937_s1 + $0x38] sm:$0xff] }
  0x23   : > { %v199_v12 = vld [vmem:[%s2937_s1 + $0x28] sm:$0xff]  ;;  %v2214_v15 = vpack.c.bf16 %v913_v11, %v912_v10  ;;  %v1589_v17 = vld [vmem:[%s2937_s1 + $0xd0] sm:$0xff]  ;;  %v415_v22 = vld [vmem:[%s2451_s20 + $0x39] sm:$0xff] }
  0x24   : > { %v1588_v14 = vld [vmem:[%s2937_s1 + $0xc8] sm:$0xff]  ;;  %v414_v21 = vld [vmem:[%s2451_s20 + $0x31] sm:$0xff]  ;;  %v1591_v23 = vld [vmem:[%s2937_s1 + $0xe0] sm:$0xff] }
  0x25   : > { %v914_v24 = vld [vmem:[%s2451_s20 + $0x33] sm:$0xff]  ;;  %v2124_v27 = vpack.c.bf16 %v415_v22, %v414_v21  ;;  %v1592_v28 = vld [vmem:[%s2937_s1 + $0xe8] sm:$0xff]  ;;  %v919_v41 = vld [vmem:[%s2451_s20 + $0x5b] sm:$0xff] }
  0x26   : > { %2075 = vmatpush3.bf16.xpose.msk.msra.mxu1 %vm2455_vm1, %v2070_v19  ;;  %v1590_v19 = vld [vmem:[%s2937_s1 + $0xd8] sm:$0xff]  ;;  %v1547_v30 = vld [vmem:[%s2937_s1 + $0x50] sm:$0xff]  ;;  %v916_v34 = vld [vmem:[%s2451_s20 + $0x43] sm:$0xff] }
  0x27   : > { %2171 = vmatpush3.bf16.xpose.msk.msra.mxu0 %vm2455_vm1, %v2166_v20  ;;  %2078 = vmatprep.subr.msk.bf16.mxu1 %vm2455_vm1, %v2076_v25  ;;  %v202_v20 = vld [vmem:[%s2937_s1 + $0x40] sm:$0xff]  ;;  %v417_v33 = vld [vmem:[%s2451_s20 + $0x49] sm:$0xff]  ;;  %v918_v40 = vld [vmem:[%s2451_s20 + $0x53] sm:$0xff] }
  0x28   : > { %2174 = vmatprep.subr.msk.bf16.mxu0 %vm2455_vm1, %v2172_v26  ;;  %v917_v35 = vld [vmem:[%s2451_s20 + $0x4b] sm:$0xff]  ;;  %v419_v39 = vld [vmem:[%s2451_s20 + $0x59] sm:$0xff]  ;;  %v920_v46 = vld [vmem:[%s2451_s20 + $0x63] sm:$0xff] }
  0x29   : > { %v421_v45 = vld [vmem:[%s2451_s20 + $0x69] sm:$0xff]  ;;  %v423_v51 = vld [vmem:[%s2451_s20 + $0x79] sm:$0xff] }
  0x2a   : > { %v921_v47 = vld [vmem:[%s2451_s20 + $0x6b] sm:$0xff]  ;;  %v922_v52 = vld [vmem:[%s2451_s20 + $0x73] sm:$0xff]  ;;  %v923_v53 = vld [vmem:[%s2451_s20 + $0x7b] sm:$0xff] }
  0x2b   : > { %v1159_v57 = vld [vmem:[%s2451_s20 + $0xc] sm:$0xff]  ;;  %v1160_v59 = vld [vmem:[%s2451_s20 + $0x14] sm:$0xff]  ;;  %v1161_v60 = vld [vmem:[%s2451_s20 + $0x1c] sm:$0xff] }
  0x2c   : > { %v1162_v7 = vld [vmem:[%s2451_s20 + $0x24] sm:$0xff]  ;;  %v1163_v8 = vld [vmem:[%s2451_s20 + $0x2c] sm:$0xff]  ;;  %v1624_v10 = vld [vmem:[%s2937_s1 + $0x118] sm:$0xff] }
  0x2d   : > { %v1553_v11 = vld [vmem:[%s2937_s1 + $0x80] sm:$0xff]  ;;  %v1628_v21 = vld [vmem:[%s2937_s1 + $0x138] sm:$0xff] }
  0x2e   : > { %2081 = vmatpush3.bf16.xpose.msk.msra.mxu1 %vm2455_vm1, %v2076_v25  ;;  %v915_v25 = vld [vmem:[%s2451_s20 + $0x3b] sm:$0xff] }
  0x2f   : > { %2177 = vmatpush3.bf16.xpose.msk.msra.mxu0 %vm2455_vm1, %v2172_v26  ;;  %2084 = vmatprep.subr.msk.bf16.mxu1 %vm2455_vm1, %v2082_v31  ;;  %v203_v26 = vld [vmem:[%s2937_s1 + $0x48] sm:$0xff]  ;;  %v2220_v29 = vpack.c.bf16 %v915_v25, %v914_v24  ;;  %v1661_v24 = vld [vmem:[%s2937_s1 + $0x170] sm:$0xff] }
  0x30   : > { %2180 = vmatprep.subr.msk.bf16.mxu0 %vm2455_vm1, %v2178_v32  ;;  %v1166_v25 = vld [vmem:[%s2451_s20 + $0x44] sm:$0xff] }
  0x36   : > { %2087 = vmatpush3.bf16.xpose.msk.msra.mxu1 %vm2455_vm1, %v2082_v31  ;;  %v1619_v31 = vld [vmem:[%s2937_s1 + $0xf0] sm:$0xff] }
  0x37   : > { %2183 = vmatpush3.bf16.xpose.msk.msra.mxu0 %vm2455_vm1, %v2178_v32  ;;  %2090 = vmatprep.subr.msk.bf16.mxu1 %vm2455_vm1, %v2088_v37  ;;  %v416_v32 = vld [vmem:[%s2451_s20 + $0x41] sm:$0xff] }
  0x38   : > { %2186 = vmatprep.subr.msk.bf16.mxu0 %vm2455_vm1, %v2184_v38  ;;  %v2130_v36 = vpack.c.bf16 %v417_v33, %v416_v32  ;;  %v1171_v32 = vld [vmem:[%s2451_s20 + $0x6c] sm:$0xff] }
  0x3e   : > { %2093 = vmatpush3.bf16.xpose.msk.msra.mxu1 %vm2455_vm1, %v2088_v37  ;;  %v2226_v37 = vpack.c.bf16 %v917_v35, %v916_v34  ;;  %v1172_v34 = vld [vmem:[%s2451_s20 + $0x74] sm:$0xff]  ;;  %v1173_v35 = vld [vmem:[%s2451_s20 + $0x7c] sm:$0xff] }
  0x3f   : > { %2189 = vmatpush3.bf16.xpose.msk.msra.mxu0 %vm2455_vm1, %v2184_v38  ;;  %2096 = vmatprep.subr.msk.bf16.mxu1 %vm2455_vm1, %v2094_v43  ;;  %v418_v38 = vld [vmem:[%s2451_s20 + $0x51] sm:$0xff] }
  0x40   : > { %2192 = vmatprep.subr.msk.bf16.mxu0 %vm2455_vm1, %v2190_v44  ;;  %v2136_v42 = vpack.c.bf16 %v419_v39, %v418_v38  ;;  %v1656_v38 = vld [vmem:[%s2937_s1 + $0x148] sm:$0xff]  ;;  %v1663_v39 = vld [vmem:[%s2937_s1 + $0x180] sm:$0xff] }
  0x46   : > { %2099 = vmatpush3.bf16.xpose.msk.msra.mxu1 %vm2455_vm1, %v2094_v43  ;;  %v2232_v43 = vpack.c.bf16 %v919_v41, %v918_v40  ;;  %v1657_v40 = vld [vmem:[%s2937_s1 + $0x150] sm:$0xff]  ;;  %v1658_v41 = vld [vmem:[%s2937_s1 + $0x158] sm:$0xff] }
  0x47   : > { %2195 = vmatpush3.bf16.xpose.msk.msra.mxu0 %vm2455_vm1, %v2190_v44  ;;  %2102 = vmatprep.subr.msk.bf16.mxu1 %vm2455_vm1, %v2100_v49  ;;  %v420_v44 = vld [vmem:[%s2451_s20 + $0x61] sm:$0xff] }
  0x48   : > { %2198 = vmatprep.subr.msk.bf16.mxu0 %vm2455_vm1, %v2196_v50  ;;  %v2142_v48 = vpack.c.bf16 %v421_v45, %v420_v44 }
  0x4e   : > { %2105 = vmatpush3.bf16.xpose.msk.msra.mxu1 %vm2455_vm1, %v2100_v49  ;;  %v2238_v49 = vpack.c.bf16 %v921_v47, %v920_v46 }
  0x4f   : > { %2201 = vmatpush3.bf16.xpose.msk.msra.mxu0 %vm2455_vm1, %v2196_v50  ;;  %2108 = vmatprep.subr.msk.bf16.mxu1 %vm2455_vm1, %v2106_v55  ;;  %v422_v50 = vld [vmem:[%s2451_s20 + $0x71] sm:$0xff] }
  0x50   : > { %2204 = vmatprep.subr.msk.bf16.mxu0 %vm2455_vm1, %v2202_v56  ;;  %v2148_v54 = vpack.c.bf16 %v423_v51, %v422_v50 }
  0x55   : > { %1856 = vmatmul.mubr.msk.f32.vlgmr.msra.gmra.mrb[0].mxu1 %vm204_vm0, %v195_v61  ;;  %v1548_v61 = vld [vmem:[%s2937_s1 + $0x58] sm:$0xff] }
  0x56   : > { %2111 = vmatpush3.bf16.xpose.msk.msra.mxu1 %vm2455_vm1, %v2106_v55  ;;  %1950 = vmatmul.mubr.msk.f32.vlgmr.msra.gmra.mrb[0].mxu0 %vm204_vm0, %v1584_v62  ;;  %v2244_v55 = vpack.c.bf16 %v923_v53, %v922_v52  ;;  %v1620_v62 = vld [vmem:[%s2937_s1 + $0xf8] sm:$0xff] }
  0x57   : > { %2207 = vmatpush3.bf16.xpose.msk.msra.mxu0 %vm2455_vm1, %v2202_v56  ;;  %2114 = vmatprep.subr.msk.bf16.mxu1 %vm2455_vm1, %v2112_v63  ;;  %v1158_v56 = vld [vmem:[%s2451_s20 + $0x4] sm:$0xff] }
  0x58   : > { %2210 = vmatprep.subr.msk.bf16.mxu0 %vm2455_vm1, %v2208_v0  ;;  %1858 = vmatprep.mubr.msk.f32.mxu1 %vm204_vm0, %v196_v1  ;;  %v2250_v58 = vpack.c.bf16 %v1159_v57, %v1158_v56  ;;  %v1621_v1 = vld [vmem:[%s2937_s1 + $0x100] sm:$0xff] }
  0x59   : > { %1952 = vmatprep.mubr.msk.f32.mxu0 %vm204_vm0, %v1585_v3  ;;  %1859 = vmatmul.mubr.msk.f32.gmra.mrb[2].mxu1 %vm204_vm0, %v197_v4  ;;  %v1550_v3 = vld [vmem:[%s2937_s1 + $0x68] sm:$0xff] }
  0x5a   : > { %1953 = vmatmul.mubr.msk.f32.gmra.mrb[2].mxu0 %vm204_vm0, %v1586_v5  ;;  %1861 = vmatprep.mubr.msk.f32.mxu1 %vm204_vm0, %v198_v6  ;;  %v1622_v4 = vld [vmem:[%s2937_s1 + $0x108] sm:$0xff]  ;;  %v1551_v5 = vld [vmem:[%s2937_s1 + $0x70] sm:$0xff] }
  0x5b   : > { %1955 = vmatprep.mubr.msk.f32.mxu0 %vm204_vm0, %v1587_v9  ;;  %v1623_v6 = vld [vmem:[%s2937_s1 + $0x110] sm:$0xff]  ;;  %v1552_v9 = vld [vmem:[%s2937_s1 + $0x78] sm:$0xff] }
  0x5d   : > { %1862 = vmatmul.mubr.msk.f32.gmra.mrb[4].mxu1 %vm204_vm0, %v199_v12  ;;  %v2262_v12 = vpack.c.bf16 %v1163_v8, %v1162_v7 }
  0x5e   : > { %2117 = vmatpush3.bf16.xpose.msk.msra.mxu1 %vm2455_vm1, %v2112_v63  ;;  %1956 = vmatmul.mubr.msk.f32.gmra.mrb[4].mxu0 %vm204_vm0, %v1588_v14  ;;  %v1549_v63 = vld [vmem:[%s2937_s1 + $0x60] sm:$0xff]  ;;  %v1554_v14 = vld [vmem:[%s2937_s1 + $0x88] sm:$0xff] }
  0x5f   : > { %2213 = vmatpush3.bf16.xpose.msk.msra.mxu0 %vm2455_vm1, %v2208_v0  ;;  %2120 = vmatprep.subr.msk.bf16.mxu1 %vm2455_vm1, %v2118_v13  ;;  %v2256_v0 = vpack.c.bf16 %v1161_v60, %v1160_v59 }
  0x60   : > { %2216 = vmatprep.subr.msk.bf16.mxu0 %vm2455_vm1, %v2214_v15  ;;  %1864 = vmatprep.mubr.msk.f32.mxu1 %vm204_vm0, %v200_v16  ;;  %v1555_v16 = vld [vmem:[%s2937_s1 + $0x90] sm:$0xff] }
  0x61   : > { %1958 = vmatprep.mubr.msk.f32.mxu0 %vm204_vm0, %v1589_v17  ;;  %1865 = vmatmul.mubr.msk.f32.gmra.mrb[6].mxu1 %vm204_vm0, %v201_v18  ;;  %v1627_v17 = vld [vmem:[%s2937_s1 + $0x130] sm:$0xff] }
  0x62   : > { %1959 = vmatmul.mubr.msk.f32.gmra.mrb[6].mxu0 %vm204_vm0, %v1590_v19  ;;  %1867 = vmatprep.mubr.msk.f32.mxu1 %vm204_vm0, %v202_v20  ;;  %v1164_v18 = vld [vmem:[%s2451_s20 + $0x34] sm:$0xff]  ;;  %v1165_v19 = vld [vmem:[%s2451_s20 + $0x3c] sm:$0xff] }
  0x63   : > { %1961 = vmatprep.mubr.msk.f32.mxu0 %vm204_vm0, %v1591_v23  ;;  %v1556_v20 = vld [vmem:[%s2937_s1 + $0x98] sm:$0xff]  ;;  %v2268_v22 = vpack.c.bf16 %v1165_v19, %v1164_v18  ;;  %v1655_v23 = vld [vmem:[%s2937_s1 + $0x140] sm:$0xff] }
  0x65   : > { %1868 = vmatmul.mubr.msk.f32.gmra.mrb[8].mxu1 %vm204_vm0, %v203_v26  ;;  %v1167_v26 = vld [vmem:[%s2451_s20 + $0x4c] sm:$0xff] }
  0x66   : > { %2123 = vmatpush3.bf16.xpose.msk.msra.mxu1 %vm2455_vm1, %v2118_v13  ;;  %1962 = vmatmul.mubr.msk.f32.gmra.mrb[8].mxu0 %vm204_vm0, %v1592_v28  ;;  %v1625_v13 = vld [vmem:[%s2937_s1 + $0x120] sm:$0xff]  ;;  %v1168_v28 = vld [vmem:[%s2451_s20 + $0x54] sm:$0xff] }
  0x67   : > { %2219 = vmatpush3.bf16.xpose.msk.msra.mxu0 %vm2455_vm1, %v2214_v15  ;;  %2126 = vmatprep.subr.msk.bf16.mxu1 %vm2455_vm1, %v2124_v27  ;;  %v1626_v15 = vld [vmem:[%s2937_s1 + $0x128] sm:$0xff] }
  0x68   : > { %2222 = vmatprep.subr.msk.bf16.mxu0 %vm2455_vm1, %v2220_v29  ;;  %1902 = vmatprep.mubr.msk.f32.mxu1 %vm204_vm0, %v1547_v30 }
  0x69   : > { %1996 = vmatprep.mubr.msk.f32.mxu0 %vm204_vm0, %v1619_v31  ;;  %v1170_v31 = vld [vmem:[%s2451_s20 + $0x64] sm:$0xff] }
  0x6a   : > { %v2286_v33 = vpack.c.bf16 %v1171_v32, %v1170_v31 }
  0x6e   : > { %2129 = vmatpush3.bf16.xpose.msk.msra.mxu1 %vm2455_vm1, %v2124_v27  ;;  %v2274_v27 = vpack.c.bf16 %v1167_v26, %v1166_v25 }
  0x6f   : > { %2225 = vmatpush3.bf16.xpose.msk.msra.mxu0 %vm2455_vm1, %v2220_v29  ;;  %2132 = vmatprep.subr.msk.bf16.mxu1 %vm2455_vm1, %v2130_v36  ;;  %v1169_v29 = vld [vmem:[%s2451_s20 + $0x5c] sm:$0xff] }
  0x70   : > { %2228 = vmatprep.subr.msk.bf16.mxu0 %vm2455_vm1, %v2226_v37  ;;  %v2280_v30 = vpack.c.bf16 %v1169_v29, %v1168_v28 }
  0x76   : > { %2135 = vmatpush3.bf16.xpose.msk.msra.mxu1 %vm2455_vm1, %v2130_v36  ;;  %v2292_v36 = vpack.c.bf16 %v1173_v35, %v1172_v34 }
  0x77   : > { %2231 = vmatpush3.bf16.xpose.msk.msra.mxu0 %vm2455_vm1, %v2226_v37  ;;  %2138 = vmatprep.subr.msk.bf16.mxu1 %vm2455_vm1, %v2136_v42  ;;  %v1662_v37 = vld [vmem:[%s2937_s1 + $0x178] sm:$0xff] }
  0x78   : > { %2234 = vmatprep.subr.msk.bf16.mxu0 %vm2455_vm1, %v2232_v43 }
  0x7e   : > { %2141 = vmatpush3.bf16.xpose.msk.msra.mxu1 %vm2455_vm1, %v2136_v42  ;;  %v1659_v42 = vld [vmem:[%s2937_s1 + $0x160] sm:$0xff] }
  0x7f   : > { %2237 = vmatpush3.bf16.xpose.msk.msra.mxu0 %vm2455_vm1, %v2232_v43  ;;  %2144 = vmatprep.subr.msk.bf16.mxu1 %vm2455_vm1, %v2142_v48  ;;  %v1660_v43 = vld [vmem:[%s2937_s1 + $0x168] sm:$0xff] }
  0x80   : > { %2240 = vmatprep.subr.msk.bf16.mxu0 %vm2455_vm1, %v2238_v49 }
  0x86   : > { %2147 = vmatpush3.bf16.xpose.msk.msra.mxu1 %vm2455_vm1, %v2142_v48 }
  0x87   : > { %2243 = vmatpush3.bf16.xpose.msk.msra.mxu0 %vm2455_vm1, %v2238_v49  ;;  %2150 = vmatprep.subr.msk.bf16.mxu1 %vm2455_vm1, %v2148_v54 }
  0x88   : > { %2246 = vmatprep.subr.msk.bf16.mxu0 %vm2455_vm1, %v2244_v55 }
  0x8e   : > { %2153 = vmatpush3.bf16.xpose.msk.msra.mxu1 %vm2455_vm1, %v2148_v54 }
  0x8f   : > { %2249 = vmatpush3.bf16.xpose.msk.msra.mxu0 %vm2455_vm1, %v2244_v55  ;;  %2298 = vmatprep.subr.msk.bf16.mxu1 %vm2455_vm1, %v2250_v58 }
  0x90   : > { %2252 = vmatprep.subr.msk.bf16.mxu0 %vm2455_vm1, %v2250_v58 }
  0x95   : > { %1903 = vmatmul.mubr.msk.f32.vlgmr.msra.gmra.mrb[0].mxu1 %vm204_vm0, %v1548_v61 }
  0x96   : > { %1997 = vmatmul.mubr.msk.f32.vlgmr.msra.gmra.mrb[0].mxu0 %vm204_vm0, %v1620_v62  ;;  %2306 = vmatpush3.bf16.xpose.msk.msra.mxu1 %vm2455_vm1, %v2250_v58 }
  0x97   : > { %2255 = vmatpush3.bf16.xpose.msk.msra.mxu0 %vm2455_vm1, %v2250_v58  ;;  %1905 = vmatprep.mubr.msk.f32.mxu1 %vm204_vm0, %v1549_v63 }
  0x98   : > { %1999 = vmatprep.mubr.msk.f32.mxu0 %vm204_vm0, %v1621_v1  ;;  %2258 = vmatprep.subr.msk.bf16.mxu0 %vm2455_vm1, %v2256_v0 }
  0x99   : > { %1906 = vmatmul.mubr.msk.f32.gmra.mrb[2].mxu1 %vm204_vm0, %v1550_v3  ;;  %2299 = vmatprep.subr.msk.bf16.mxu1 %vm2455_vm1, %v2256_v0 }
  0x9a   : > { %2000 = vmatmul.mubr.msk.f32.gmra.mrb[2].mxu0 %vm204_vm0, %v1622_v4  ;;  %1908 = vmatprep.mubr.msk.f32.mxu1 %vm204_vm0, %v1551_v5 }
  0x9b   : > { %2002 = vmatprep.mubr.msk.f32.mxu0 %vm204_vm0, %v1623_v6 }
  0x9d   : > { %1909 = vmatmul.mubr.msk.f32.gmra.mrb[4].mxu1 %vm204_vm0, %v1552_v9 }
  0x9e   : > { %2003 = vmatmul.mubr.msk.f32.gmra.mrb[4].mxu0 %vm204_vm0, %v1624_v10  ;;  %2307 = vmatpush3.bf16.xpose.msk.msra.mxu1 %vm2455_vm1, %v2256_v0 }
  0x9f   : > { %2261 = vmatpush3.bf16.xpose.msk.msra.mxu0 %vm2455_vm1, %v2256_v0  ;;  %1911 = vmatprep.mubr.msk.f32.mxu1 %vm204_vm0, %v1553_v11 }
  0xa0   : > { %2005 = vmatprep.mubr.msk.f32.mxu0 %vm204_vm0, %v1625_v13  ;;  %2264 = vmatprep.subr.msk.bf16.mxu0 %vm2455_vm1, %v2262_v12 }
  0xa1   : > { %1912 = vmatmul.mubr.msk.f32.gmra.mrb[6].mxu1 %vm204_vm0, %v1554_v14  ;;  %2300 = vmatprep.subr.msk.bf16.mxu1 %vm2455_vm1, %v2262_v12 }
  0xa2   : > { %2006 = vmatmul.mubr.msk.f32.gmra.mrb[6].mxu0 %vm204_vm0, %v1626_v15  ;;  %1914 = vmatprep.mubr.msk.f32.mxu1 %vm204_vm0, %v1555_v16 }
  0xa3   : > { %2008 = vmatprep.mubr.msk.f32.mxu0 %vm204_vm0, %v1627_v17 }
  0xa5   : > { %1915 = vmatmul.mubr.msk.f32.gmra.mrb[8].mxu1 %vm204_vm0, %v1556_v20 }
  0xa6   : > { %2009 = vmatmul.mubr.msk.f32.gmra.mrb[8].mxu0 %vm204_vm0, %v1628_v21  ;;  %2308 = vmatpush3.bf16.xpose.msk.msra.mxu1 %vm2455_vm1, %v2262_v12 }
  0xa7   : > { %2267 = vmatpush3.bf16.xpose.msk.msra.mxu0 %vm2455_vm1, %v2262_v12  ;;  %2301 = vmatprep.subr.msk.bf16.mxu1 %vm2455_vm1, %v2268_v22 }
  0xa8   : > { %2270 = vmatprep.subr.msk.bf16.mxu0 %vm2455_vm1, %v2268_v22  ;;  %2043 = vmatprep.mubr.msk.f32.mxu0 %vm204_vm0, %v1655_v23 }
  0xa9   : > { %2052 = vmatprep.mubr.msk.f32.mxu1 %vm204_vm0, %v1661_v24 }
  0xae   : > { %2309 = vmatpush3.bf16.xpose.msk.msra.mxu1 %vm2455_vm1, %v2268_v22 }
  0xaf   : > { %2273 = vmatpush3.bf16.xpose.msk.msra.mxu0 %vm2455_vm1, %v2268_v22  ;;  %2302 = vmatprep.subr.msk.bf16.mxu1 %vm2455_vm1, %v2274_v27 }
  0xb0   : > { %2276 = vmatprep.subr.msk.bf16.mxu0 %vm2455_vm1, %v2274_v27 }
  0xb6   : > { %2310 = vmatpush3.bf16.xpose.msk.msra.mxu1 %vm2455_vm1, %v2274_v27 }
  0xb7   : > { %2279 = vmatpush3.bf16.xpose.msk.msra.mxu0 %vm2455_vm1, %v2274_v27  ;;  %2303 = vmatprep.subr.msk.bf16.mxu1 %vm2455_vm1, %v2280_v30 }
  0xb8   : > { %2282 = vmatprep.subr.msk.bf16.mxu0 %vm2455_vm1, %v2280_v30 }
  0xbe   : > { %2311 = vmatpush3.bf16.xpose.msk.msra.mxu1 %vm2455_vm1, %v2280_v30 }
  0xbf   : > { %2285 = vmatpush3.bf16.xpose.msk.msra.mxu0 %vm2455_vm1, %v2280_v30  ;;  %2304 = vmatprep.subr.msk.bf16.mxu1 %vm2455_vm1, %v2286_v33 }
  0xc0   : > { %2288 = vmatprep.subr.msk.bf16.mxu0 %vm2455_vm1, %v2286_v33 }
  0xc6   : > { %2312 = vmatpush3.bf16.xpose.msk.msra.mxu1 %vm2455_vm1, %v2286_v33 }
  0xc7   : > { %2291 = vmatpush3.bf16.xpose.msk.msra.mxu0 %vm2455_vm1, %v2286_v33  ;;  %2305 = vmatprep.subr.msk.bf16.mxu1 %vm2455_vm1, %v2292_v36 }
  0xc8   : > { %2294 = vmatprep.subr.msk.bf16.mxu0 %vm2455_vm1, %v2292_v36 }
  0xce   : > { %2313 = vmatpush3.bf16.xpose.msk.msra.mxu1 %vm2455_vm1, %v2292_v36 }
  0xcf   : > { %2297 = vmatpush3.bf16.xpose.msk.msra.mxu0 %vm2455_vm1, %v2292_v36 }
  0xd5   : > { %2053 = vmatmul.mubr.msk.f32.vlgmr.msra.gmra.mrb[10].mxu1 %vm204_vm0, %v1662_v37 }
  0xd6   : > { %2044 = vmatmul.mubr.msk.f32.vlgmr.msra.gmra.mrb[0].mxu0 %vm204_vm0, %v1656_v38  ;;  %2055 = vmatprep.mubr.msk.f32.mxu1 %vm204_vm0, %v1663_v39 }
  0xd7   : > { %2046 = vmatprep.mubr.msk.f32.mxu0 %vm204_vm0, %v1657_v40 }
  0xd9   : > { %2056 = vmatmul.mubr.msk.f32.gmra.mrb[12].mxu1 %vm204_vm0, %v1664_v2 }
  0xda   : > { %2047 = vmatmul.mubr.msk.f32.gmra.mrb[2].mxu0 %vm204_vm0, %v1658_v41 }
  0xdb   : > { %2049 = vmatprep.mubr.msk.f32.mxu0 %vm204_vm0, %v1659_v42 }
  0xde   : > { %2050 = vmatmul.mubr.msk.f32.gmra.mrb[4].mxu0 %vm204_vm0, %v1660_v43 }
 0x168   : > { %v1904_v44 = vpop.f32.mrb[0].mxu1 }
 0x169   : > { %v579_v45 = vpop.f32.mrb[1].mxu1 }
 0x16c   : > { %v1907_v46 = vpop.f32.mrb[2].mxu1 }
 0x16d   : > { %v589_v47 = vpop.f32.mrb[3].mxu1 }
 0x170   : > { %v1910_v48 = vpop.f32.mrb[4].mxu1 }
 0x171   : > { %v599_v49 = vpop.f32.mrb[5].mxu1 }
 0x174   : > { %v1913_v50 = vpop.f32.mrb[6].mxu1 }
 0x175   : > { %v2007_v51 = vpop.f32.mrb[6].mxu0  ;;  %v609_v52 = vpop.f32.mrb[7].mxu1 }
 0x176   : > { %v2320_v53 = vadd.f32 %v2007_v51, %v1913_v50  ;;  %v1109_v54 = vpop.f32.mrb[7].mxu0 }
 0x177   : > { %v2322_v55 = vadd.f32 %v1109_v54, %v609_v52 }
 0x178   : > { %v1916_v56 = vpop.f32.mrb[8].mxu1 }
 0x179   : > { %v2010_v57 = vpop.f32.mrb[8].mxu0  ;;  %v619_v58 = vpop.f32.mrb[9].mxu1 }
 0x17a   : > { %v2324_v59 = vadd.f32 %v2010_v57, %v1916_v56  ;;  %v1119_v60 = vpop.f32.mrb[9].mxu0 }
 0x17b   : > { %v2326_v61 = vadd.f32 %v1119_v60, %v619_v58 }
 0x1a8   : > { %v2054_v62 = vpop.f32.mrb[10].mxu1 }
 0x1a9   : > { %v2045_v63 = vpop.f32.mrb[0].mxu0  ;;  %v2321_v0 = vadd.f32 %v2320_v53, %v2054_v62  ;;  %v1359_v1 = vpop.f32.mrb[11].mxu1 }
 0x1aa   : > { %v2314_v3 = vadd.f32 %v2045_v63, %v1904_v44  ;;  %v1329_v4 = vpop.f32.mrb[1].mxu0  ;;  %v2323_v5 = vadd.f32 %v2322_v55, %v1359_v1 }
 0x1ab   : > { %1425 = vst [vmem:[%s177_s27 + $0x38] sm:$0xff] %v2321_v0  ;;  %v2315_v6 = vadd.f32 %v1329_v4, %v579_v45 }
 0x1ac   : > { %1419 = vst [vmem:[%s177_s27 + $0x8] sm:$0xff] %v2314_v3  ;;  %1424 = vst [vmem:[%s177_s27 + $0x30] sm:$0xff] %v2323_v5  ;;  %v2057_v7 = vpop.f32.mrb[12].mxu1 }
 0x1ad   : > { %1418 = vst [vmem:[%s177_s27] sm:$0xff] %v2315_v6  ;;  %v2048_v8 = vpop.f32.mrb[2].mxu0  ;;  %v2325_v9 = vadd.f32 %v2324_v59, %v2057_v7  ;;  %v1369_v10 = vpop.f32.mrb[13].mxu1 }
 0x1ae   : > { %v2316_v11 = vadd.f32 %v2048_v8, %v1907_v46  ;;  %v1339_v12 = vpop.f32.mrb[3].mxu0  ;;  %v2327_v13 = vadd.f32 %v2326_v61, %v1369_v10 }
 0x1af   : > { %1427 = vst [vmem:[%s177_s27 + $0x48] sm:$0xff] %v2325_v9  ;;  %v2317_v14 = vadd.f32 %v1339_v12, %v589_v47 }
 0x1b0   : > { %1421 = vst [vmem:[%s177_s27 + $0x18] sm:$0xff] %v2316_v11  ;;  %1426 = vst [vmem:[%s177_s27 + $0x40] sm:$0xff] %v2327_v13 }
 0x1b1   : > { %1420 = vst [vmem:[%s177_s27 + $0x10] sm:$0xff] %v2317_v14  ;;  %v2051_v15 = vpop.f32.mrb[4].mxu0 }
 0x1b2   : > { %v2318_v16 = vadd.f32 %v2051_v15, %v1910_v48  ;;  %v1349_v17 = vpop.f32.mrb[5].mxu0 }
 0x1b3   : > { %v2319_v18 = vadd.f32 %v1349_v17, %v599_v49 }
 0x1b4   : > { %1423 = vst [vmem:[%s177_s27 + $0x28] sm:$0xff] %v2318_v16 }
 0x1b5   : > { %1422 = vst [vmem:[%s177_s27 + $0x20] sm:$0xff] %v2319_v18 }
 0x1b6 PF: > { %s12_s11 = sadd.s32 1, %s2402_s11   ;;  %s2941_s9 = smov %s2398_s10 }
 0x1b7   : > { %p9_p5 = scmp.ge.s32.totalorder %s12_s11, 4   ;;  %s2942_s10 = smov %s2944_s12 }
 0x1b9   :  { %11 = sbr.rel (!%p9_p5) target bundleno = 2 (0x2), region = 62 }

</bundles_post_ra>
